<compile_context>
chip_gen: v6e
topology: v6e:2x2x1
jax: 0.10.0
libtpu: 0.0.40
codegen_flags: <defaults>
</compile_context>

<pallas_src>
import jax
import jax.numpy as jnp
from jax import lax
from jax.experimental import pallas as pl
from jax.experimental.pallas import tpu as pltpu


def mlp_kernel(x_ref, w1_ref, b1_ref, w2_ref, b2_ref, w34_ref, b34_ref, o_ref):
    # hidden: Linear(10, 20) followed by ReLU (F.relu(self.hidden(X)))
    h = jnp.dot(x_ref[...], w1_ref[...], preferred_element_type=jnp.float32) + b1_ref[...]
    h = jnp.maximum(h, 0.0)
    # se[0]: Linear(20, 40), se[1]: ReLU
    h = jnp.dot(h, w2_ref[...], preferred_element_type=jnp.float32) + b2_ref[...]
    h = jnp.maximum(h, 0.0)
    # se[2]: Linear(40, 20) + out: Linear(20, 2), fused (no activation between them)
    # Output last dim is 2 (<128 lanes) so the store is a masked vst.msk; write
    # volume is tiny, so we keep the natural layout.
    o_ref[...] = jnp.dot(h, w34_ref[...], preferred_element_type=jnp.float32) + b34_ref[...]


def mlp_forward(x, params):
    (w1, b1, w2, b2, w3, b3, w4, b4) = params
    B = x.shape[0]
    in_dim = w1.shape[0]
    out_dim = w4.shape[1]

    # Fold the two activation-free final Linears in f32 at full precision so the
    # fused result stays within tight tolerance of the unfused math.
    hp = lax.Precision.HIGHEST
    w34 = jnp.dot(w3, w4, precision=hp)              # (40, 2)
    b34 = jnpp = jnp.dot(b3, w4, precision=hp) + b4  # (1, 2)

    # Batch tile: multiple of 256 for full MXU passes along M on v6e/v7x
    # (also a multiple of 128 for v5e). Working set per tile (padded to 128
    # lanes, f32, double-buffered x/out) stays well under v7x's 64 MiB VMEM.
    TB = B if B <= 1024 else 1024
    grid = (pl.cdiv(B, TB),)

    def batch_spec(feat):
        return pl.BlockSpec((TB, feat), lambda i: (i, 0))

    def resident_spec(shape):
        # Weights / biases: same block every step -> stay resident in VMEM.
        return pl.BlockSpec(shape, lambda i: (0, 0))

    weight_bytes = 4 * (w1.size + b1.size + w2.size + b2.size + w34.size + b34.size)
    cost = pl.CostEstimate(
        flops=2 * B * (w1.shape[0] * w1.shape[1]
                       + w2.shape[0] * w2.shape[1]
                       + w34.shape[0] * w34.shape[1]),
        transcendentals=0,
        bytes_accessed=4 * (B * in_dim + B * out_dim) + weight_bytes,
    )

    return pl.pallas_call(
        mlp_kernel,
        out_shape=jax.ShapeDtypeStruct((B, out_dim), jnp.float32),
        grid=grid,
        in_specs=[
            batch_spec(in_dim),
            resident_spec(w1.shape), resident_spec(b1.shape),
            resident_spec(w2.shape), resident_spec(b2.shape),
            resident_spec(w34.shape), resident_spec(b34.shape),
        ],
        out_specs=batch_spec(out_dim),
        compiler_params=pltpu.CompilerParams(
            dimension_semantics=("parallel",),
        ),
        cost_estimate=cost,
    )(x, w1, b1, w2, b2, w34, b34)


def init_linear(key, in_f, out_f):
    # Deterministic init mimicking PyTorch's default Linear init
    # (uniform in [-1/sqrt(in_f), 1/sqrt(in_f)]); weight stored as (in, out).
    kw, kb = jax.random.split(key)
    bound = 1.0 / (in_f ** 0.5)
    w = jax.random.uniform(kw, (in_f, out_f), jnp.float32, -bound, bound)
    b = jax.random.uniform(kb, (1, out_f), jnp.float32, -bound, bound)
    return w, b


def make_params(key):
    k1, k2, k3, k4 = jax.random.split(key, 4)
    w1, b1 = init_linear(k1, 10, 20)   # self.hidden
    w2, b2 = init_linear(k2, 20, 40)   # self.se[0]
    w3, b3 = init_linear(k3, 40, 20)   # self.se[2]
    w4, b4 = init_linear(k4, 20, 2)    # self.out
    return (w1, b1, w2, b2, w3, b3, w4, b4)


def reference_forward(x, params):
    # Unfused reference matching the original PyTorch forward exactly.
    (w1, b1, w2, b2, w3, b3, w4, b4) = params
    hp = lax.Precision.HIGHEST
    h = jnp.maximum(jnp.dot(x, w1, precision=hp) + b1, 0.0)
    h = jnp.maximum(jnp.dot(h, w2, precision=hp) + b2, 0.0)
    h = jnp.dot(h, w3, precision=hp) + b3
    return jnp.dot(h, w4, precision=hp) + b4


if __name__ == "__main__":
    key = jax.random.PRNGKey(0)
    kx, kp = jax.random.split(key)
    batch = 8
    x = jax.random.normal(kx, (batch, 10), jnp.float32)
    params = make_params(kp)

    out = mlp_forward(x, params)
    out = jax.block_until_ready(out)

    ref = reference_forward(x, params)
    assert out.shape == (batch, 2)
    assert jnp.allclose(out, ref, atol=1e-4, rtol=1e-4), (
        float(jnp.max(jnp.abs(out - ref)))
    )
    print("KERNEL_OK")
</pallas_src>

<mosaic_0001>
module attributes {stable_mosaic.version = 11 : i64} {
  func.func @mlp_kernel(%arg0: i32, %arg1: memref<8x10xf32, #tpu.memory_space<vmem>>, %arg2: memref<10x20xf32, #tpu.memory_space<vmem>>, %arg3: memref<1x20xf32, #tpu.memory_space<vmem>>, %arg4: memref<20x40xf32, #tpu.memory_space<vmem>>, %arg5: memref<1x40xf32, #tpu.memory_space<vmem>>, %arg6: memref<40x2xf32, #tpu.memory_space<vmem>>, %arg7: memref<1x2xf32, #tpu.memory_space<vmem>>, %arg8: memref<8x2xf32, #tpu.memory_space<vmem>>) attributes {dimension_semantics = [#tpu.dimension_semantics<parallel>], iteration_bounds = array<i64: 1>, scalar_prefetch = 0 : i64, scratch_operands = 0 : i64, tpu.core_type = #tpu.core_type<tc>, window_params = [{transform_indices = @transform_0, window_bounds = array<i64: 8, 10>}, {pipeline_mode = #tpu.pipeline_mode<synchronous>, transform_indices = @transform_1, window_bounds = array<i64: 10, 20>}, {pipeline_mode = #tpu.pipeline_mode<synchronous>, transform_indices = @transform_2, window_bounds = array<i64: 1, 20>}, {pipeline_mode = #tpu.pipeline_mode<synchronous>, transform_indices = @transform_3, window_bounds = array<i64: 20, 40>}, {pipeline_mode = #tpu.pipeline_mode<synchronous>, transform_indices = @transform_4, window_bounds = array<i64: 1, 40>}, {pipeline_mode = #tpu.pipeline_mode<synchronous>, transform_indices = @transform_5, window_bounds = array<i64: 40, 2>}, {pipeline_mode = #tpu.pipeline_mode<synchronous>, transform_indices = @transform_6, window_bounds = array<i64: 1, 2>}, {transform_indices = @transform_7, window_bounds = array<i64: 8, 2>}]} {
    %c0 = arith.constant 0 : index
    %c0_0 = arith.constant 0 : index
    %0 = vector.load %arg1[%c0, %c0_0] : memref<8x10xf32, #tpu.memory_space<vmem>>, vector<8x10xf32>
    %c0_1 = arith.constant 0 : index
    %c0_2 = arith.constant 0 : index
    %1 = vector.load %arg2[%c0_1, %c0_2] : memref<10x20xf32, #tpu.memory_space<vmem>>, vector<10x20xf32>
    %cst = arith.constant dense<0.000000e+00> : vector<8x20xf32>
    %2 = tpu.matmul %0, %1, %cst {dimension_numbers = #tpu.dot_dimension_numbers<[1], [0], [0], [1], [0, 0, 1, 1], [], []>} : vector<8x10xf32>, vector<10x20xf32>, vector<8x20xf32> -> vector<8x20xf32>
    %c0_3 = arith.constant 0 : index
    %c0_4 = arith.constant 0 : index
    %3 = vector.load %arg3[%c0_3, %c0_4] : memref<1x20xf32, #tpu.memory_space<vmem>>, vector<1x20xf32>
    %4 = vector.broadcast %3 : vector<1x20xf32> to vector<8x20xf32>
    %5 = arith.addf %2, %4 : vector<8x20xf32>
    %cst_5 = arith.constant 0.000000e+00 : f32
    %6 = vector.broadcast %cst_5 : f32 to vector<8x20xf32>
    %7 = arith.maximumf %5, %6 : vector<8x20xf32>
    %c0_6 = arith.constant 0 : index
    %c0_7 = arith.constant 0 : index
    %8 = vector.load %arg4[%c0_6, %c0_7] : memref<20x40xf32, #tpu.memory_space<vmem>>, vector<20x40xf32>
    %cst_8 = arith.constant dense<0.000000e+00> : vector<8x40xf32>
    %9 = tpu.matmul %7, %8, %cst_8 {dimension_numbers = #tpu.dot_dimension_numbers<[1], [0], [0], [1], [0, 0, 1, 1], [], []>} : vector<8x20xf32>, vector<20x40xf32>, vector<8x40xf32> -> vector<8x40xf32>
    %c0_9 = arith.constant 0 : index
    %c0_10 = arith.constant 0 : index
    %10 = vector.load %arg5[%c0_9, %c0_10] : memref<1x40xf32, #tpu.memory_space<vmem>>, vector<1x40xf32>
    %11 = vector.broadcast %10 : vector<1x40xf32> to vector<8x40xf32>
    %12 = arith.addf %9, %11 : vector<8x40xf32>
    %cst_11 = arith.constant 0.000000e+00 : f32
    %13 = vector.broadcast %cst_11 : f32 to vector<8x40xf32>
    %14 = arith.maximumf %12, %13 : vector<8x40xf32>
    %c0_12 = arith.constant 0 : index
    %c0_13 = arith.constant 0 : index
    %15 = vector.load %arg6[%c0_12, %c0_13] : memref<40x2xf32, #tpu.memory_space<vmem>>, vector<40x2xf32>
    %cst_14 = arith.constant dense<0.000000e+00> : vector<8x2xf32>
    %16 = tpu.matmul %14, %15, %cst_14 {dimension_numbers = #tpu.dot_dimension_numbers<[1], [0], [0], [1], [0, 0, 1, 1], [], []>} : vector<8x40xf32>, vector<40x2xf32>, vector<8x2xf32> -> vector<8x2xf32>
    %c0_15 = arith.constant 0 : index
    %c0_16 = arith.constant 0 : index
    %17 = vector.load %arg7[%c0_15, %c0_16] : memref<1x2xf32, #tpu.memory_space<vmem>>, vector<1x2xf32>
    %18 = vector.broadcast %17 : vector<1x2xf32> to vector<8x2xf32>
    %19 = arith.addf %16, %18 : vector<8x2xf32>
    %c0_17 = arith.constant 0 : index
    %c0_18 = arith.constant 0 : index
    %20 = vector.load %arg8[%c0_17, %c0_18] : memref<8x2xf32, #tpu.memory_space<vmem>>, vector<8x2xf32>
    tpu.vector_store %arg8[%c0_17, %c0_18], %19 {strides = array<i32>} : memref<8x2xf32, #tpu.memory_space<vmem>>, vector<8x2xf32>,
    return
  }
  func.func @transform_0(%arg0: i32) -> (i32, i32) {
    %c0_i32 = arith.constant 0 : i32
    %c0_i32_0 = arith.constant 0 : i32
    return %arg0, %c0_i32 : i32, i32
  }
  func.func @transform_1(%arg0: i32) -> (i32, i32) {
    %c0_i32 = arith.constant 0 : i32
    %c0_i32_0 = arith.constant 0 : i32
    %c0_i32_1 = arith.constant 0 : i32
    return %c0_i32, %c0_i32_0 : i32, i32
  }
  func.func @transform_2(%arg0: i32) -> (i32, i32) {
    %c0_i32 = arith.constant 0 : i32
    %c0_i32_0 = arith.constant 0 : i32
    %c0_i32_1 = arith.constant 0 : i32
    return %c0_i32, %c0_i32_0 : i32, i32
  }
  func.func @transform_3(%arg0: i32) -> (i32, i32) {
    %c0_i32 = arith.constant 0 : i32
    %c0_i32_0 = arith.constant 0 : i32
    %c0_i32_1 = arith.constant 0 : i32
    return %c0_i32, %c0_i32_0 : i32, i32
  }
  func.func @transform_4(%arg0: i32) -> (i32, i32) {
    %c0_i32 = arith.constant 0 : i32
    %c0_i32_0 = arith.constant 0 : i32
    %c0_i32_1 = arith.constant 0 : i32
    return %c0_i32, %c0_i32_0 : i32, i32
  }
  func.func @transform_5(%arg0: i32) -> (i32, i32) {
    %c0_i32 = arith.constant 0 : i32
    %c0_i32_0 = arith.constant 0 : i32
    %c0_i32_1 = arith.constant 0 : i32
    return %c0_i32, %c0_i32_0 : i32, i32
  }
  func.func @transform_6(%arg0: i32) -> (i32, i32) {
    %c0_i32 = arith.constant 0 : i32
    %c0_i32_0 = arith.constant 0 : i32
    %c0_i32_1 = arith.constant 0 : i32
    return %c0_i32, %c0_i32_0 : i32, i32
  }
  func.func @transform_7(%arg0: i32) -> (i32, i32) {
    %c0_i32 = arith.constant 0 : i32
    %c0_i32_0 = arith.constant 0 : i32
    return %arg0, %c0_i32 : i32, i32
  }
}

</mosaic_0001>

<bundles_post_ra>
// kernel: tpu_custom_call.1
= control target key start
LH: loop header
LB: loop body
LE: loop exit
PB: predicated region body
PF: predicated region fallthrough
CT: control target
= control target key end

     0   :  { %12 = vsyncpa [#allocation3], 0  ;;  %s384_s24 = smov [#allocation2]   ;;  %s472_s0 = inlined_call_operand.hbm [shape: f32[8,10], index: 0, kind: input, shape index: {}]   ;;  %s473_s1 = inlined_call_operand.vmem [shape: f32[10,20], index: 1, kind: input, shape index: {}]   ;;  %s474_s2 = inlined_call_operand.vmem [shape: f32[1,20], index: 2, kind: input, shape index: {}]   ;;  %s475_s3 = inlined_call_operand.vmem [shape: f32[20,40], index: 3, kind: input, shape index: {}]   ;;  %s476_s4 = inlined_call_operand.vmem [shape: f32[1,40], index: 4, kind: input, shape index: {}]   ;;  %s477_s5 = inlined_call_operand.vmem [shape: f32[40,2], index: 5, kind: input, shape index: {}]   ;;  %s478_s6 = inlined_call_operand.vmem [shape: f32[1,2], index: 6, kind: input, shape index: {}]   ;;  %s479_s7 = inlined_call_operand.vmem [shape: f32[8,2], index: 7, kind: output, shape index: {}]  }
   0x1   :  { %s19_s25 = sshll.u32 %s384_s24, 4  ;;  %s20_s25 = int_to_ptr.vmem [resolvable:$true] %s19_s25 }
   0x2   :  { %s370_s26 = scalar_lea.vmem %s20_s25, 128  ;;  %p375_p1 = scmp.lt.s32.totalorder %s20_s25, %s20_s25 }
   0x3   :  { %p371_p0 = scmp.ne.s32.totalorder %s20_s25, %s370_s26  ;;  %p376_p2 = scmp.lt.s32.totalorder %s370_s26, %s370_s26 }
   0x5   :  { %p377_p3 = por %p376_p2, %p375_p1 }
   0x7   :  { %p378_p4 = pnand %p377_p3, %p371_p0 }
   0x9   :  { %381 = shalt.err (!%p378_p4)
}
   0xa   :  { %22 = dma.hbm_to_vmem [thread:$0]  %s472_s0, 128, %s20_s25, [#allocation3]  }
   0xb   :  { %382 = dma.done.wait [#allocation3], 128  }
   0xc   :  { %383 = vsyncadd [#allocation3], 4294967168  ;;  %v385_v0 = vmov 0.0   ;;  %vm386_vm0 = vmmov 0   ;;  %vm52_vm1 = vcmask 1041408   ;;  %v39_v2 = vld [vmem:[%s473_s1] sm:$0xff] }
   0xd   :  { %330 = vmatprep.subr.mxu1 %v385_v0  ;;  %334 = vmatprep.mubr.msk.f32.mxu1 %vm386_vm0, %v385_v0  ;;  %v40_v1 = vld [vmem:[%s473_s1 + $0x8] sm:$0x3]  ;;  %v38_v3 = vld [vmem:[#allocation2] sm:$0xff]  ;;  %vm48_vm2 = vcmask 80896   ;;  %v129_v4 = vld [vmem:[%s475_s3 + $0x10] sm:$0xf] }
   0xe   :  { %346 = vmatprep.subr.mxu0 %v385_v0  ;;  %356 = vmatprep.mubr.msk.f32.mxu0 %vm386_vm0, %v385_v0  ;;  %vm141_vm3 = vcmask 1043456   ;;  %v128_v5 = vld [vmem:[%s475_s3 + $0x8] sm:$0xff]  ;;  %v127_v6 = vld [vmem:[%s475_s3] sm:$0xff]  ;;  %v219_v8 = vld [vmem:[%s477_s5 + $0x18] sm:$0xff]  ;;  %vm137_vm4 = vcmask 162816   ;;  %vm228_vm5 = vcmask 326656  }
   0xf   :  { %331 = vmatpush3.msk.msra.mxu1 %vm52_vm1, %v40_v1  ;;  %v220_v7 = vld [vmem:[%s477_s5 + $0x20] sm:$0xff]  ;;  %v218_v14 = vld [vmem:[%s477_s5 + $0x10] sm:$0xff]  ;;  %v217_v15 = vld [vmem:[%s477_s5 + $0x8] sm:$0xff]  ;;  %vm302_vm6 = vcmask 15360  }
  0x10   :  { %332 = vmatprep.subr.mxu1 %v385_v0  ;;  %347 = vmatpush3.msra.mxu0 %v220_v7  ;;  %v309_v9 = vld [vmem:[%s474_s2] ss:$0 sm:$0xff] }
  0x11   :  { %333 = vmatpush3.msra.mxu1 %v39_v2  ;;  %348 = vmatprep.subr.mxu0 %v385_v0  ;;  %v216_v16 = vld [vmem:[%s477_s5] sm:$0xff] }
  0x12   :  { %335 = vmatmul.mubr.msk.f32.vlgmr.msra.gmra.mxu1 %vm48_vm2, %v38_v3  ;;  %337 = vmatprep.subr.mxu1 %v385_v0  ;;  %v312_v17 = vld [vmem:[%s476_s4] ss:$0 sm:$0xff] }
  0x13   :  { %343 = vmatprep.mubr.msk.f32.mxu1 %vm386_vm0, %v385_v0  ;;  %338 = vmatpush3.msk.msra.mxu1 %vm141_vm3, %v129_v4  ;;  %v315_v22 = vld [vmem:[%s478_s6] ss:$0 sm:$0xff] }
  0x14   :  { %339 = vmatprep.subr.mxu1 %v385_v0  ;;  %349 = vmatpush3.msra.mxu0 %v219_v8 }
  0x15   :  { %340 = vmatpush3.msra.mxu1 %v128_v5  ;;  %350 = vmatprep.subr.mxu0 %v385_v0 }
  0x16   :  { %341 = vmatprep.subr.mxu1 %v385_v0  ;;  %351 = vmatpush3.msra.mxu0 %v218_v14 }
  0x17   :  { %342 = vmatpush3.msra.mxu1 %v127_v6  ;;  %352 = vmatprep.subr.mxu0 %v385_v0 }
  0x18   :  { %353 = vmatpush3.msra.mxu0 %v217_v15 }
  0x19   :  { %354 = vmatprep.subr.mxu0 %v385_v0 }
  0x1a   :  { %355 = vmatpush3.msra.mxu0 %v216_v16 }
  0xd2   :  { %v122_v10 = vpop.f32.mrf.mxu1 }
  0xd3   :  { %v123_v11 = vadd.f32 %v309_v9, %v122_v10 }
  0xd4   :  { %v336_v12 = vpop.f32.mrf.mxu1 }
  0xd5   :  { %v126_v13 = vmax.f32 %v123_v11, 0.0 }
  0xd7   :  { %344 = vmatmul.mubr.msk.f32.vlgmr.msra.gmra.mxu1 %vm137_vm4, %v126_v13 }
 0x197   :  { %v211_v18 = vpop.f32.mrf.mxu1 }
 0x198   :  { %v212_v19 = vadd.f32 %v312_v17, %v211_v18 }
 0x199   :  { %v345_v20 = vpop.f32.mrf.mxu1 }
 0x19a   :  { %v215_v21 = vmax.f32 %v212_v19, 0.0 }
 0x19c   :  { %357 = vmatmul.mubr.msk.f32.vlgmr.msra.gmra.mxu0 %vm228_vm5, %v215_v21 }
 0x25c   :  { %v298_v23 = vpop.f32.mrf.mxu0 }
 0x25d   :  { %v299_v24 = vadd.f32 %v315_v22, %v298_v23 }
 0x25e   :  { %v358_v25 = vpop.f32.mrf.mxu0 }
 0x25f   :  { %303 = vst.msk [vmem:[%s479_s7] sm:$0xff] %vm302_vm6, %v299_v24 }
 0x260   :  { %308 = vsyncpa [#allocation3], 1 }

</bundles_post_ra>
